<compile_context>
chip_gen: v6e
topology: v6e:2x2x1
jax: 0.10.0
libtpu: 0.0.40
codegen_flags: <defaults>
</compile_context>

<pallas_src>
import functools

import jax
import jax.numpy as jnp
from jax import lax
from jax.experimental import pallas as pl
from jax.experimental.pallas import tpu as pltpu


def _round_up(a: int, m: int) -> int:
    return (a + m - 1) // m * m


def _round_down(a: int, m: int) -> int:
    return max(m, a // m * m)


def _physical_vmem_bytes() -> int:
    try:
        info = pltpu.get_tpu_info()
        vmem = getattr(info, "vmem_capacity_bytes", None)
        if vmem:
            return int(vmem)
    except Exception:
        pass
    return 64 << 20  # conservative: v7x per-TensorCore VMEM


def _vmem_needed(tm, tn, tk, in_itemsize, out_itemsize, depth) -> int:
    return (depth * (tm * tk + tn * tk) * in_itemsize   # pipelined x & weight tiles
            + 2 * tn * 4                                # bias (1, tn), double-buffered
            + 2 * tm * tn * out_itemsize                # output tile, double-buffered
            + tm * tn * 4)                              # f32 accumulator scratch


def _fc_kernel(x_ref, w_ref, b_ref, o_ref, acc_ref, *, activation):
    # x_ref: (tm, tk), w_ref: (tn, tk) native nn.Linear layout, b_ref: (1, tn) f32,
    # o_ref: (tm, tn) lane-dense, acc_ref: (tm, tn) f32 resident across the K axis.
    k = pl.program_id(2)

    @pl.when(k == 0)
    def _():
        acc_ref[...] = jnp.zeros_like(acc_ref)

    # (tm, tk) x (tn, tk)^T -> (tm, tn); contraction on the last dim of both operands,
    # so the wrapper never has to transpose the weight in HBM.
    acc_ref[...] += lax.dot_general(
        x_ref[...], w_ref[...],
        dimension_numbers=(((1,), (1,)), ((), ())),
        preferred_element_type=jnp.float32,
    )

    @pl.when(k == pl.num_programs(2) - 1)
    def _():
        acc = acc_ref[...] + b_ref[...]  # bias added exactly once, in f32
        if activation == "relu":
            acc = jnp.maximum(acc, 0.0)
        elif activation == "tanh":
            acc = jnp.tanh(acc)
        # activation is None -> identity
        o_ref[...] = acc.astype(o_ref.dtype)


def fully_connected(x, weight, bias, activation=None, *,
                    tm=None, tn=512, tk=2048, use_bf16=True):
    """Pallas TPU implementation of FullyConnectedLayer.forward: y = act(x @ W.T + b).

    x:      (B, n_in)     float32
    weight: (n_out, n_in) float32  (native PyTorch nn.Linear layout; never transposed)
    bias:   (n_out,)      float32
    """
    B, n_in = x.shape
    n_out = weight.shape[0]
    out_dtype = x.dtype

    in_itemsize = 2 if use_bf16 else jnp.dtype(x.dtype).itemsize
    out_itemsize = jnp.dtype(out_dtype).itemsize

    # ---- Tile selection -------------------------------------------------------
    if tm is None:
        tm = 512 if B >= 512 else 256  # larger tm cuts weight re-streaming (v5e)
    # Shrink to the (padded) problem; tm multiple of 8, tn/tk multiples of 128.
    tm = min(tm, _round_up(B, 8))
    tn = min(tn, _round_up(n_out, 128))
    tk = min(tk, _round_up(n_in, 128))

    # Fit the VMEM budget (headroom for Mosaic internal scratch); conservative depth=3.
    phys_vmem = _physical_vmem_bytes()
    budget = phys_vmem * 3 // 4
    while _vmem_needed(tm, tn, tk, in_itemsize, out_itemsize, 3) > budget and tk > 128:
        tk = _round_down(tk // 2, 128)
    while _vmem_needed(tm, tn, tk, in_itemsize, out_itemsize, 3) > budget and tn > 128:
        tn = _round_down(tn // 2, 128)
    while _vmem_needed(tm, tn, tk, in_itemsize, out_itemsize, 3) > budget and tm > 8:
        tm = _round_down(tm // 2, 8)

    # v7x megacore: guarantee >= 2 blocks along the "parallel" axes when possible so
    # both TensorCores get work.
    if (_round_up(B, tm) // tm) * (_round_up(n_out, tn) // tn) == 1:
        if tn >= 256:
            tn = _round_down(tn // 2, 128)
        elif tm >= 16:
            tm = _round_down(tm // 2, 8)

    Bp = _round_up(B, tm)
    Np = _round_up(n_out, tn)
    Kp = _round_up(n_in, tk)
    grid = (Bp // tm, Np // tn, Kp // tk)
    depth = 3 if grid[2] >= 3 else 2  # deepen K pipelining only when it can help

    # ---- Pad only when unaligned (zero K-padding contributes nothing) ----------
    # NOTE: for production, pre-pad (and pre-cast) the weight once at parameter init
    # so these pads never run per call.
    xp = x if (Bp, Kp) == (B, n_in) else jnp.pad(x, ((0, Bp - B), (0, Kp - n_in)))
    wp = weight if (Np, Kp) == (n_out, n_in) else jnp.pad(
        weight, ((0, Np - n_out), (0, Kp - n_in)))
    bp = bias if Np == n_out else jnp.pad(bias, (0, Np - n_out))
    bp = bp.reshape(1, Np).astype(jnp.float32)

    if use_bf16:
        xp = xp.astype(jnp.bfloat16)
        wp = wp.astype(jnp.bfloat16)

    needed = _vmem_needed(tm, tn, tk, in_itemsize, out_itemsize, depth)
    vmem_limit = int(min(budget, max(32 << 20, needed + (8 << 20))))

    cost = pl.CostEstimate(
        flops=2 * Bp * Kp * Np,
        transcendentals=(Bp * Np) if activation == "tanh" else 0,
        bytes_accessed=(Bp * Kp * in_itemsize
                        + Np * Kp * in_itemsize
                        + Np * 4
                        + Bp * Np * out_itemsize),
    )

    kernel = functools.partial(_fc_kernel, activation=activation)

    def make_call(buf_depth):
        if buf_depth > 2:
            x_spec = pl.BlockSpec((tm, tk), lambda i, j, k: (i, k),
                                  pipeline_mode=pl.Buffered(buf_depth))
            w_spec = pl.BlockSpec((tn, tk), lambda i, j, k: (j, k),
                                  pipeline_mode=pl.Buffered(buf_depth))
        else:
            x_spec = pl.BlockSpec((tm, tk), lambda i, j, k: (i, k))
            w_spec = pl.BlockSpec((tn, tk), lambda i, j, k: (j, k))
        return pl.pallas_call(
            kernel,
            out_shape=jax.ShapeDtypeStruct((Bp, Np), out_dtype),
            grid_spec=pltpu.PrefetchScalarGridSpec(
                num_scalar_prefetch=0,
                grid=grid,
                in_specs=[
                    x_spec,                                         # x tile (M, K)
                    w_spec,                                         # W tile (N, K)
                    pl.BlockSpec((1, tn), lambda i, j, k: (0, j)),  # bias tile (1, N)
                ],
                out_specs=pl.BlockSpec((tm, tn), lambda i, j, k: (i, j)),
                scratch_shapes=[pltpu.VMEM((tm, tn), jnp.float32)],
            ),
            compiler_params=pltpu.CompilerParams(
                dimension_semantics=("parallel", "parallel", "arbitrary"),
                vmem_limit_bytes=vmem_limit,
            ),
            cost_estimate=cost,
        )

    try:
        out = make_call(depth)(xp, wp, bp)
    except Exception:
        if depth <= 2:
            raise
        out = make_call(2)(xp, wp, bp)  # fallback: default double-buffering

    if (Bp, Np) != (B, n_out):
        out = out[:B, :n_out]
    return out


def xavier_uniform(key, n_out, n_in, dtype=jnp.float32):
    # Matches torch.nn.init.xavier_uniform_ (gain=1): U(-a, a), a = sqrt(6/(fan_in+fan_out))
    a = jnp.sqrt(6.0 / (n_in + n_out))
    return jax.random.uniform(key, (n_out, n_in), dtype=dtype, minval=-a, maxval=a)


if __name__ == "__main__":
    key = jax.random.PRNGKey(0)

    # --- Test 1: module defaults at small shapes (batch=8, n_in=32, n_out=64) ---
    B, n_in, n_out = 8, 32, 64
    kx, kw, kb = jax.random.split(key, 3)
    x = jax.random.normal(kx, (B, n_in), dtype=jnp.float32)
    weight = xavier_uniform(kw, n_out, n_in)
    bound = 1.0 / jnp.sqrt(jnp.float32(n_in))
    bias = jax.random.uniform(kb, (n_out,), dtype=jnp.float32, minval=-bound, maxval=bound)

    ref = x @ weight.T + bias

    # Exact f32 path (matches the PyTorch f32 reference tightly).
    y = jax.block_until_ready(fully_connected(x, weight, bias, activation=None,
                                              use_bf16=False))
    assert y.shape == (B, n_out)
    assert jnp.allclose(y, ref, atol=1e-5, rtol=1e-5)

    # Default fast path: bf16 MXU operands + f32 accumulation (looser tolerance).
    y_bf16 = jax.block_until_ready(fully_connected(x, weight, bias, activation=None))
    assert jnp.allclose(y_bf16, ref, atol=3e-2, rtol=3e-2)

    y_relu = jax.block_until_ready(fully_connected(x, weight, bias, activation="relu",
                                                   use_bf16=False))
    assert jnp.allclose(y_relu, jnp.maximum(ref, 0.0), atol=1e-5, rtol=1e-5)

    y_tanh = jax.block_until_ready(fully_connected(x, weight, bias, activation="tanh",
                                                   use_bf16=False))
    assert jnp.allclose(y_tanh, jnp.tanh(ref), atol=1e-5, rtol=1e-5)

    # --- Test 2: multi-tile (M, N, K) path incl. K-accumulation & ragged padding ---
    B2, n_in2, n_out2 = 10, 256, 300   # B2 pads to 16, n_out2 pads to 384
    k1, k2, k3 = jax.random.split(jax.random.PRNGKey(1), 3)
    x2 = jax.random.normal(k1, (B2, n_in2), dtype=jnp.float32)
    w2 = xavier_uniform(k2, n_out2, n_in2)
    b2 = jax.random.uniform(k3, (n_out2,), dtype=jnp.float32,
                            minval=-1.0 / jnp.sqrt(jnp.float32(n_in2)),
                            maxval=1.0 / jnp.sqrt(jnp.float32(n_in2)))
    ref2 = jnp.maximum(x2 @ w2.T + b2, 0.0)
    y2 = jax.block_until_ready(
        fully_connected(x2, w2, b2, activation="relu", tm=8, tn=128, tk=128,
                        use_bf16=False))
    assert y2.shape == (B2, n_out2)
    assert jnp.allclose(y2, ref2, atol=1e-4, rtol=1e-4)

    # --- Test 3: long K grid -> deep (Buffered(3)) input pipelining path ---
    B3, n_in3, n_out3 = 16, 512, 256
    k4, k5, k6 = jax.random.split(jax.random.PRNGKey(2), 3)
    x3 = jax.random.normal(k4, (B3, n_in3), dtype=jnp.float32)
    w3 = xavier_uniform(k5, n_out3, n_in3)
    b3 = jax.random.uniform(k6, (n_out3,), dtype=jnp.float32, minval=-0.05, maxval=0.05)
    ref3 = jnp.tanh(x3 @ w3.T + b3)
    y3 = jax.block_until_ready(
        fully_connected(x3, w3, b3, activation="tanh", tm=8, tn=128, tk=128,
                        use_bf16=False))
    assert y3.shape == (B3, n_out3)
    assert jnp.allclose(y3, ref3, atol=1e-4, rtol=1e-4)

    print("KERNEL_OK")
</pallas_src>

<mosaic_0001>
module attributes {stable_mosaic.version = 11 : i64} {
  func.func @_fc_kernel(%arg0: i32, %arg1: i32, %arg2: i32, %arg3: memref<8x128xf32, #tpu.memory_space<vmem>>, %arg4: memref<128x128xf32, #tpu.memory_space<vmem>>, %arg5: memref<1x128xf32, #tpu.memory_space<vmem>>, %arg6: memref<8x128xf32, #tpu.memory_space<vmem>>, %arg7: memref<8x128xf32, #tpu.memory_space<vmem>>) attributes {dimension_semantics = [#tpu.dimension_semantics<parallel>, #tpu.dimension_semantics<parallel>, #tpu.dimension_semantics<arbitrary>], iteration_bounds = array<i64: 1, 1, 1>, scalar_prefetch = 0 : i64, scratch_operands = 1 : i64, tpu.core_type = #tpu.core_type<tc>, window_params = [{transform_indices = @transform_0, window_bounds = array<i64: 8, 128>}, {transform_indices = @transform_1, window_bounds = array<i64: 128, 128>}, {transform_indices = @transform_2, window_bounds = array<i64: 1, 128>}, {transform_indices = @transform_3, window_bounds = array<i64: 8, 128>}]} {
    %c0_i32 = arith.constant 0 : i32
    %0 = arith.cmpi eq, %arg2, %c0_i32 : i32
    %1 = arith.extui %0 : i1 to i32
    %c0_i32_0 = arith.constant 0 : i32
    %2 = arith.cmpi ne, %1, %c0_i32_0 : i32
    scf.if %2 {
      %cst_10 = arith.constant 0.000000e+00 : f32
      %12 = vector.broadcast %cst_10 : f32 to vector<8x128xf32>
      %c0_11 = arith.constant 0 : index
      %c0_12 = arith.constant 0 : index
      %13 = vector.load %arg7[%c0_11, %c0_12] : memref<8x128xf32, #tpu.memory_space<vmem>>, vector<8x128xf32>
      tpu.vector_store %arg7[%c0_11, %c0_12], %12 {strides = array<i32>} : memref<8x128xf32, #tpu.memory_space<vmem>>, vector<8x128xf32>,
    } else {
    }
    %c0 = arith.constant 0 : index
    %c0_1 = arith.constant 0 : index
    %3 = vector.load %arg7[%c0, %c0_1] : memref<8x128xf32, #tpu.memory_space<vmem>>, vector<8x128xf32>
    %c0_2 = arith.constant 0 : index
    %c0_3 = arith.constant 0 : index
    %4 = vector.load %arg3[%c0_2, %c0_3] : memref<8x128xf32, #tpu.memory_space<vmem>>, vector<8x128xf32>
    %c0_4 = arith.constant 0 : index
    %c0_5 = arith.constant 0 : index
    %5 = vector.load %arg4[%c0_4, %c0_5] : memref<128x128xf32, #tpu.memory_space<vmem>>, vector<128x128xf32>
    %cst = arith.constant dense<0.000000e+00> : vector<8x128xf32>
    %6 = tpu.matmul %4, %5, %cst {dimension_numbers = #tpu.dot_dimension_numbers<[1], [1], [0], [0], [0, 0, 1, 0], [], []>} : vector<8x128xf32>, vector<128x128xf32>, vector<8x128xf32> -> vector<8x128xf32>
    %7 = arith.addf %3, %6 : vector<8x128xf32>
    %c0_6 = arith.constant 0 : index
    %c0_7 = arith.constant 0 : index
    %8 = vector.load %arg7[%c0_6, %c0_7] : memref<8x128xf32, #tpu.memory_space<vmem>>, vector<8x128xf32>
    tpu.vector_store %arg7[%c0_6, %c0_7], %7 {strides = array<i32>} : memref<8x128xf32, #tpu.memory_space<vmem>>, vector<8x128xf32>,
    %c0_i32_8 = arith.constant 0 : i32
    %9 = arith.cmpi eq, %arg2, %c0_i32_8 : i32
    %10 = arith.extui %9 : i1 to i32
    %c0_i32_9 = arith.constant 0 : i32
    %11 = arith.cmpi ne, %10, %c0_i32_9 : i32
    scf.if %11 {
      %c0_10 = arith.constant 0 : index
      %c0_11 = arith.constant 0 : index
      %12 = vector.load %arg7[%c0_10, %c0_11] : memref<8x128xf32, #tpu.memory_space<vmem>>, vector<8x128xf32>
      %c0_12 = arith.constant 0 : index
      %c0_13 = arith.constant 0 : index
      %13 = vector.load %arg5[%c0_12, %c0_13] : memref<1x128xf32, #tpu.memory_space<vmem>>, vector<1x128xf32>
      %14 = vector.broadcast %13 : vector<1x128xf32> to vector<8x128xf32>
      %15 = arith.addf %12, %14 : vector<8x128xf32>
      %c0_14 = arith.constant 0 : index
      %c0_15 = arith.constant 0 : index
      %16 = vector.load %arg6[%c0_14, %c0_15] : memref<8x128xf32, #tpu.memory_space<vmem>>, vector<8x128xf32>
      tpu.vector_store %arg6[%c0_14, %c0_15], %15 {strides = array<i32>} : memref<8x128xf32, #tpu.memory_space<vmem>>, vector<8x128xf32>,
    } else {
    }
    return
  }
  func.func @transform_0(%arg0: i32, %arg1: i32, %arg2: i32) -> (i32, i32) {
    %c0_i32 = arith.constant 0 : i32
    return %arg0, %arg2 : i32, i32
  }
  func.func @transform_1(%arg0: i32, %arg1: i32, %arg2: i32) -> (i32, i32) {
    %c0_i32 = arith.constant 0 : i32
    return %arg1, %arg2 : i32, i32
  }
  func.func @transform_2(%arg0: i32, %arg1: i32, %arg2: i32) -> (i32, i32) {
    %c0_i32 = arith.constant 0 : i32
    %c0_i32_0 = arith.constant 0 : i32
    return %c0_i32, %arg1 : i32, i32
  }
  func.func @transform_3(%arg0: i32, %arg1: i32, %arg2: i32) -> (i32, i32) {
    %c0_i32 = arith.constant 0 : i32
    return %arg0, %arg1 : i32, i32
  }
}

</mosaic_0001>

<bundles_post_ra>
// kernel: tpu_custom_call.1
= control target key start
LH: loop header
LB: loop body
LE: loop exit
PB: predicated region body
PF: predicated region fallthrough
CT: control target
= control target key end

     0   :  { %8 = vsyncpa [#allocation4], 0  ;;  %s330_s0 = inlined_call_operand.hbm [shape: f32[8,128], index: 0, kind: input, shape index: {}]   ;;  %s331_s1 = inlined_call_operand.hbm [shape: f32[128,128], index: 1, kind: input, shape index: {}]   ;;  %s332_s2 = inlined_call_operand.vmem [shape: f32[1,128], index: 2, kind: input, shape index: {}]   ;;  %s333_s3 = inlined_call_operand.hbm [shape: f32[8,128], index: 3, kind: output, shape index: {}]  }
   0x1   :  { %9 = vsyncpa [#allocation7], 0 }
   0x2   :  { %10 = vsyncpa [#allocation5], 0  ;;  %s291_s12 = smov [#allocation3]   ;;  %s292_s14 = smov [#allocation6]  }
   0x3   :  { %s17_s13 = sshll.u32 %s291_s12, 4  ;;  %s26_s15 = sshll.u32 %s292_s14, 4  ;;  %s18_s13 = int_to_ptr.vmem [resolvable:$true] %s17_s13  ;;  %s27_s15 = int_to_ptr.vmem [resolvable:$true] %s26_s15 }
   0x4   :  { %s233_s16 = scalar_lea.vmem %s18_s13, 128  ;;  %p238_p1 = scmp.lt.s32.totalorder %s18_s13, %s18_s13 }
   0x5   :  { %p234_p0 = scmp.ne.s32.totalorder %s18_s13, %s233_s16  ;;  %p239_p2 = scmp.lt.s32.totalorder %s233_s16, %s233_s16 }
   0x7   :  { %p240_p3 = por %p239_p2, %p238_p1 }
   0x9   :  { %p241_p4 = pnand %p240_p3, %p234_p0 }
   0xb   :  { %244 = shalt.err (!%p241_p4)
}
   0xc   :  { %20 = dma.hbm_to_vmem [thread:$0]  %s330_s0, 128, %s18_s13, [#allocation4]  }
   0xd   :  { %s253_s19 = scalar_lea.vmem %s27_s15, 2048  ;;  %p258_p6 = scmp.lt.s32.totalorder %s27_s15, %s27_s15 }
   0xe   :  { %p254_p5 = scmp.ne.s32.totalorder %s27_s15, %s253_s19  ;;  %p259_p7 = scmp.lt.s32.totalorder %s253_s19, %s253_s19 }
  0x10   :  { %p260_p8 = por %p259_p7, %p258_p6 }
  0x12   :  { %p261_p9 = pnand %p260_p8, %p254_p5 }
  0x14   :  { %264 = shalt.err (!%p261_p9)
}
  0x15   :  { %s293_s20 = smov 128   ;;  %s294_s21 = smov 8  }
  0x16   :  { %32 = dma.hbm_to_vmem [thread:$0]  %s331_s1, 2048, %s27_s15, [#allocation7], %s293_s20, %s293_s20, %s294_s21  }
  0x17   :  { %285 = dma.done.wait [#allocation4], 128  }
  0x18   :  { %286 = vsyncadd [#allocation4], 4294967168 }
  0x19   :  { %287 = dma.done.wait [#allocation7], 2048  }
  0x1a   :  { %288 = vsyncadd [#allocation7], 4294965248  ;;  %v295_v0 = vmov 0.0   ;;  %vm296_vm0 = vmmov 0   ;;  %v63_v1 = vld [vmem:[#allocation6 + $0x78] sm:$0xff]  ;;  %v62_v2 = vld [vmem:[#allocation6 + $0x70] sm:$0xff] }
  0x1b   :  { %183 = vmatprep.subr.mxu0 %v295_v0  ;;  %215 = vmatprep.mubr.msk.f32.mxu0 %vm296_vm0, %v295_v0  ;;  %v61_v3 = vld [vmem:[#allocation6 + $0x68] sm:$0xff]  ;;  %v60_v4 = vld [vmem:[#allocation6 + $0x60] sm:$0xff]  ;;  %v59_v5 = vld [vmem:[#allocation6 + $0x58] sm:$0xff]  ;;  %s297_s24 = smov [#allocation8]  }
  0x1c   :  { %184 = vmatpush3.xpose.msra.mxu0 %v63_v1  ;;  %v58_v6 = vld [vmem:[#allocation6 + $0x50] sm:$0xff]  ;;  %v57_v7 = vld [vmem:[#allocation6 + $0x48] sm:$0xff]  ;;  %v56_v8 = vld [vmem:[#allocation6 + $0x40] sm:$0xff]  ;;  %s155_s25 = sshll.u32 %s297_s24, 4  ;;  %s156_s25 = int_to_ptr.vmem [resolvable:$true] %s155_s25 }
  0x1d   :  { %185 = vmatprep.subr.mxu0 %v295_v0  ;;  %v55_v9 = vld [vmem:[#allocation6 + $0x38] sm:$0xff]  ;;  %v54_v10 = vld [vmem:[#allocation6 + $0x30] sm:$0xff]  ;;  %v53_v11 = vld [vmem:[#allocation6 + $0x28] sm:$0xff]  ;;  %s265_s26 = scalar_lea.vmem %s156_s25, 128  ;;  %p270_p11 = scmp.lt.s32.totalorder %s156_s25, %s156_s25 }
  0x1e   :  { %v52_v12 = vld [vmem:[#allocation6 + $0x20] sm:$0xff]  ;;  %v51_v13 = vld [vmem:[#allocation6 + $0x18] sm:$0xff]  ;;  %v50_v14 = vld [vmem:[#allocation6 + $0x10] sm:$0xff]  ;;  %p266_p10 = scmp.ne.s32.totalorder %s156_s25, %s265_s26  ;;  %p271_p12 = scmp.lt.s32.totalorder %s265_s26, %s265_s26 }
  0x1f   :  { %v49_v15 = vld [vmem:[#allocation6 + $0x8] sm:$0xff]  ;;  %v48_v16 = vld [vmem:[#allocation6] sm:$0xff]  ;;  %v47_v17 = vld [vmem:[#allocation3] sm:$0xff] }
  0x20   :  { %186 = vmatpush3.xpose.msra.mxu0 %v62_v2  ;;  %v165_v18 = vld [vmem:[%s332_s2] ss:$0 sm:$0xff]  ;;  %p272_p13 = por %p271_p12, %p270_p11 }
  0x21   :  { %187 = vmatprep.subr.mxu0 %v295_v0 }
  0x22   :  { %p273_p0 = pnand %p272_p13, %p266_p10 }
  0x24   :  { %188 = vmatpush3.xpose.msra.mxu0 %v61_v3 }
  0x25   :  { %189 = vmatprep.subr.mxu0 %v295_v0 }
  0x28   :  { %190 = vmatpush3.xpose.msra.mxu0 %v60_v4 }
  0x29   :  { %191 = vmatprep.subr.mxu0 %v295_v0 }
  0x2c   :  { %192 = vmatpush3.xpose.msra.mxu0 %v59_v5 }
  0x2d   :  { %193 = vmatprep.subr.mxu0 %v295_v0 }
  0x30   :  { %194 = vmatpush3.xpose.msra.mxu0 %v58_v6 }
  0x31   :  { %195 = vmatprep.subr.mxu0 %v295_v0 }
  0x34   :  { %196 = vmatpush3.xpose.msra.mxu0 %v57_v7 }
  0x35   :  { %197 = vmatprep.subr.mxu0 %v295_v0 }
  0x38   :  { %198 = vmatpush3.xpose.msra.mxu0 %v56_v8 }
  0x39   :  { %199 = vmatprep.subr.mxu0 %v295_v0 }
  0x3c   :  { %200 = vmatpush3.xpose.msra.mxu0 %v55_v9 }
  0x3d   :  { %201 = vmatprep.subr.mxu0 %v295_v0 }
  0x40   :  { %202 = vmatpush3.xpose.msra.mxu0 %v54_v10 }
  0x41   :  { %203 = vmatprep.subr.mxu0 %v295_v0 }
  0x44   :  { %204 = vmatpush3.xpose.msra.mxu0 %v53_v11 }
  0x45   :  { %205 = vmatprep.subr.mxu0 %v295_v0 }
  0x48   :  { %206 = vmatpush3.xpose.msra.mxu0 %v52_v12 }
  0x49   :  { %207 = vmatprep.subr.mxu0 %v295_v0 }
  0x4c   :  { %208 = vmatpush3.xpose.msra.mxu0 %v51_v13 }
  0x4d   :  { %209 = vmatprep.subr.mxu0 %v295_v0 }
  0x50   :  { %210 = vmatpush3.xpose.msra.mxu0 %v50_v14 }
  0x51   :  { %211 = vmatprep.subr.mxu0 %v295_v0 }
  0x54   :  { %212 = vmatpush3.xpose.msra.mxu0 %v49_v15 }
  0x55   :  { %213 = vmatprep.subr.mxu0 %v295_v0 }
  0x58   :  { %214 = vmatpush3.xpose.msra.mxu0 %v48_v16 }
  0x5b   :  { %216 = vmatmul.mubr.f32.vlgmr.msra.gmra.mxu0 %v47_v17 }
 0x11b   :  { %v130_v19 = vpop.f32.mrf.mxu0 }
 0x11c   :  { %v147_v20 = vadd.f32 %v165_v18, %v130_v19 }
 0x11d   :  { %v217_v21 = vpop.f32.mrf.mxu0 }
 0x11e   :  { %148 = vst [vmem:[#allocation8] sm:$0xff] %v147_v20 }
 0x11f   :  { %276 = shalt.err (!%p273_p0)
}
 0x120   :  { %158 = dma.vmem_to_hbm [thread:$0]  %s156_s25, 128, %s333_s3, [#allocation5]  }
 0x121   :  { %289 = dma.done.wait [#allocation5], 128  }
 0x122   :  { %290 = vsyncadd [#allocation5], 4294967168 }
 0x123   :  { %162 = vsyncpa [#allocation4], 1 }
 0x124   :  { %163 = vsyncpa [#allocation7], 1 }
 0x125   :  { %164 = vsyncpa [#allocation5], 1 }

</bundles_post_ra>
